<compile_context>
chip_gen: v6e
topology: v6e:2x2x1
jax: 0.10.0
libtpu: 0.0.40
codegen_flags: <defaults>
</compile_context>

<pallas_src>
import functools

import numpy as np

import jax
import jax.numpy as jnp
from jax import lax
from jax.experimental import pallas as pl
from jax.experimental.pallas import tpu as pltpu


# ---------------------------------------------------------------------------
# Host-side helpers: small, shape-static matrices built once per call.
# ---------------------------------------------------------------------------
def _adaptive_pool_matrix(in_size, out_size):
    """(out_size, in_size) averaging matrix == PyTorch AdaptiveAvgPool (1-D)."""
    m = np.zeros((out_size, in_size), np.float32)
    for p in range(out_size):
        start = (p * in_size) // out_size
        end = -((-(p + 1) * in_size) // out_size)        # ceil((p+1)*in/out)
        m[p, start:end] = 1.0 / float(end - start)
    return m


def _bilinear_matrix(out_size, in_size):
    """(out_size, in_size) PyTorch bilinear (align_corners=False) weights."""
    m = np.zeros((out_size, in_size), np.float32)
    scale = in_size / out_size
    for i in range(out_size):
        src = max((i + 0.5) * scale - 0.5, 0.0)
        i0 = min(int(np.floor(src)), in_size - 1)
        i1 = min(i0 + 1, in_size - 1)
        frac = src - i0
        m[i, i0] += 1.0 - frac
        m[i, i1] += frac
    return m


# ---------------------------------------------------------------------------
# Pallas kernel: whole PPContextModule forward for one batch element.
# ---------------------------------------------------------------------------
def _pp_context_kernel(x_ref, pmat_ref, w1_ref, mask_ref, b1c_ref,
                       w3_ref, b3_ref, mtaps_ref, o_ref, g_scr, *, n_stages):
    # x_ref:     (1, Cin, H*W)      bf16  NCHW with lane-dense flattened spatial
    # pmat_ref:  (H*W, P)           bf16  multi-bin adaptive-avg-pool matrix
    # w1_ref:    (S, Cinter, Cin)   bf16  per-stage 1x1 conv (BN scale folded)
    # mask_ref:  (S, 1, P)          f32   1.0 on the columns owned by stage s
    # b1c_ref:   (Cinter, P)        f32   per-column folded BN shift (stage-wise)
    # w3_ref:    (KK, Cout, Cinter) bf16  3x3 conv-out weights per tap (BN folded)
    # b3_ref:    (Cout, 1)          f32   conv-out folded BN shift
    # mtaps_ref: (KK*P, H*W)        bf16  tap-shifted (zero-padded) upsample matrix
    # o_ref:     (1, Cout, H*W)     f32
    # g_scr:     (Cout, KK*P)       bf16  conv taps projected onto stage features
    n_taps = w3_ref.shape[0]

    # 1) All adaptive-average-pool bins at once: one lane-dense matmul.
    pooled = jnp.dot(x_ref[0], pmat_ref[...],
                     preferred_element_type=jnp.float32)          # (Cin, P)
    pooled = pooled.astype(jnp.bfloat16)

    # 2) Per-stage 1x1 ConvX (conv + folded BN shift + ReLU) in the pooled
    #    basis.  Each stage owns a disjoint set of columns, so column masks
    #    fuse the stages without any strided stores or scratch traffic.
    y = jnp.dot(w1_ref[0], pooled,
                preferred_element_type=jnp.float32) * mask_ref[0]
    for s in range(1, n_stages):
        y += jnp.dot(w1_ref[s], pooled,
                     preferred_element_type=jnp.float32) * mask_ref[s]
    feats = jnp.maximum(y + b1c_ref[...], 0.0).astype(jnp.bfloat16)  # (Cinter, P)
    ptot = feats.shape[1]

    # 3) Project the 9 conv-out taps onto the (rank-P) stage features.
    for t in range(n_taps):
        gt = jnp.dot(w3_ref[t], feats,
                     preferred_element_type=jnp.float32)          # (Cout, P)
        g_scr[:, t * ptot:(t + 1) * ptot] = gt.astype(jnp.bfloat16)

    # 4) Single big-K, lane-dense matmul: bilinear upsample + stage sum +
    #    zero padding + 3x3 conv, all fused.  Then folded-BN shift + ReLU.
    acc = jnp.dot(g_scr[...], mtaps_ref[...],
                  preferred_element_type=jnp.float32)             # (Cout, H*W)
    o_ref[0] = jnp.maximum(acc + b3_ref[...], 0.0).astype(o_ref.dtype)


# ---------------------------------------------------------------------------
# Public wrapper (NCHW in, NCHW out - no transposes, no explicit padding).
# ---------------------------------------------------------------------------
def pp_context_forward(x_nchw, params, *, bin_sizes=(1, 2, 4), eps=1e-5):
    N, cin, H, W = x_nchw.shape
    ksize = 3
    pad = ksize // 2
    Hp, Wp = H + 2 * pad, W + 2 * pad
    HW = H * W
    n_taps = ksize * ksize
    S = len(bin_sizes)
    ptot = int(sum(s * s for s in bin_sizes))

    cinter = params["stage_w"][0].shape[0]
    cout = params["out_w"].shape[0]

    # -- fold eval-mode BN into conv weights; only the shift stays in-kernel --
    w1_list, b1_list = [], []
    for i in range(S):
        w = params["stage_w"][i].reshape(cinter, cin).astype(jnp.float32)
        bn = params["stage_bn"][i]
        sc = bn["gamma"] / jnp.sqrt(bn["var"] + eps)
        w1_list.append(w * sc[:, None])
        b1_list.append(bn["beta"] - bn["mean"] * sc)
    w1 = jnp.stack(w1_list).astype(jnp.bfloat16)                       # (S, Ci, Cin)

    # per-column stage bias (Cinter, P) and per-stage column masks (S, 1, P)
    col_stage = np.concatenate(
        [np.full(s * s, i, np.int32) for i, s in enumerate(bin_sizes)])
    b1_cols = jnp.stack(b1_list)[col_stage].T.astype(jnp.float32)       # (Ci, P)
    mask_np = np.zeros((S, 1, ptot), np.float32)
    off = 0
    for i, s in enumerate(bin_sizes):
        mask_np[i, 0, off:off + s * s] = 1.0
        off += s * s
    mask = jnp.asarray(mask_np)

    bn3 = params["out_bn"]
    sc3 = bn3["gamma"] / jnp.sqrt(bn3["var"] + eps)
    w3f = params["out_w"].astype(jnp.float32) * sc3[:, None, None, None]
    w3s = jnp.transpose(w3f, (2, 3, 0, 1)).reshape(n_taps, cout, cinter)
    w3s = w3s.astype(jnp.bfloat16)                                     # (KK, Co, Ci)
    b3 = (bn3["beta"] - bn3["mean"] * sc3).reshape(cout, 1).astype(jnp.float32)

    # -- static pooling / tap-shifted (zero-padded) upsample matrices --
    pool_blocks, up3 = [], []
    for s in bin_sizes:
        ph = _adaptive_pool_matrix(H, s)
        pw = _adaptive_pool_matrix(W, s)
        pool_blocks.append(np.einsum("pi,qj->ijpq", ph, pw).reshape(HW, s * s))
        rh = np.zeros((Hp, s), np.float32)
        rh[pad:pad + H] = _bilinear_matrix(H, s)
        rw = np.zeros((Wp, s), np.float32)
        rw[pad:pad + W] = _bilinear_matrix(W, s)
        up3.append(np.einsum("hp,wq->pqhw", rh, rw).reshape(s * s, Hp, Wp))
    pmat = jnp.asarray(np.concatenate(pool_blocks, axis=1), jnp.bfloat16)  # (HW, P)

    taps = []
    for kh in range(ksize):
        for kw in range(ksize):
            taps.append(np.concatenate(
                [m[:, kh:kh + H, kw:kw + W].reshape(-1, HW) for m in up3], axis=0))
    mtaps = jnp.asarray(np.concatenate(taps, axis=0), jnp.bfloat16)        # (KK*P, HW)

    # -- NCHW kept; free flatten of the spatial dims, bf16 for MXU / half DMA --
    x_flat = x_nchw.reshape(N, cin, HW).astype(jnp.bfloat16)

    kernel = functools.partial(_pp_context_kernel, n_stages=S)

    out = pl.pallas_call(
        kernel,
        out_shape=jax.ShapeDtypeStruct((N, cout, HW), jnp.float32),
        grid=(N,),
        in_specs=[
            pl.BlockSpec((1, cin, HW), lambda n: (n, 0, 0)),
            pl.BlockSpec((HW, ptot), lambda n: (0, 0)),
            pl.BlockSpec((S, cinter, cin), lambda n: (0, 0, 0)),
            pl.BlockSpec((S, 1, ptot), lambda n: (0, 0, 0)),
            pl.BlockSpec((cinter, ptot), lambda n: (0, 0)),
            pl.BlockSpec((n_taps, cout, cinter), lambda n: (0, 0, 0)),
            pl.BlockSpec((cout, 1), lambda n: (0, 0)),
            pl.BlockSpec((n_taps * ptot, HW), lambda n: (0, 0)),
        ],
        out_specs=pl.BlockSpec((1, cout, HW), lambda n: (n, 0, 0)),
        scratch_shapes=[
            pltpu.VMEM((cout, n_taps * ptot), jnp.bfloat16),
        ],
        compiler_params=pltpu.CompilerParams(
            dimension_semantics=("parallel",)),
    )(x_flat, pmat, w1, mask, b1_cols, w3s, b3, mtaps)

    return out.reshape(N, cout, H, W)


# ---------------------------------------------------------------------------
# Plain-JAX reference (independent path) for validation.
# ---------------------------------------------------------------------------
def _adaptive_avg_pool_ref(x, s):
    _, _, H, W = x.shape
    rows = []
    for p in range(s):
        hs, he = (p * H) // s, -((-(p + 1) * H) // s)
        cols = []
        for q in range(s):
            ws, we = (q * W) // s, -((-(q + 1) * W) // s)
            cols.append(jnp.mean(x[:, :, hs:he, ws:we], axis=(2, 3)))
        rows.append(jnp.stack(cols, axis=-1))
    return jnp.stack(rows, axis=-2)                       # (N, C, s, s)


def _bilinear_resize_ref(x, out_h, out_w):
    _, _, in_h, in_w = x.shape

    def src_index(out_size, in_size):
        i = np.arange(out_size, dtype=np.float64)
        src = np.maximum((i + 0.5) * (in_size / out_size) - 0.5, 0.0)
        i0 = np.minimum(np.floor(src).astype(np.int32), in_size - 1)
        i1 = np.minimum(i0 + 1, in_size - 1)
        return i0, i1, (src - i0).astype(np.float32)

    h0, h1, fh = src_index(out_h, in_h)
    w0, w1, fw = src_index(out_w, in_w)
    fh = jnp.asarray(fh)[None, None, :, None]
    fw = jnp.asarray(fw)[None, None, None, :]
    xr = x[:, :, h0, :] * (1.0 - fh) + x[:, :, h1, :] * fh
    return xr[:, :, :, w0] * (1.0 - fw) + xr[:, :, :, w1] * fw


def _bn_ref(y, bn, eps):
    inv = 1.0 / jnp.sqrt(bn["var"] + eps)
    return ((y - bn["mean"][None, :, None, None]) * inv[None, :, None, None]
            * bn["gamma"][None, :, None, None] + bn["beta"][None, :, None, None])


def _reference(x, params, *, bin_sizes=(1, 2, 4), eps=1e-5):
    _, _, H, W = x.shape
    out = None
    for i, s in enumerate(bin_sizes):
        p = _adaptive_avg_pool_ref(x, s)
        w1 = params["stage_w"][i][:, :, 0, 0]
        y = jnp.einsum("oc,ncpq->nopq", w1, p)
        y = jnp.maximum(_bn_ref(y, params["stage_bn"][i], eps), 0.0)
        y = _bilinear_resize_ref(y, H, W)
        out = y if out is None else out + y
    z = lax.conv_general_dilated(out, params["out_w"], (1, 1), "SAME",
                                 dimension_numbers=("NCHW", "OIHW", "NCHW"))
    return jnp.maximum(_bn_ref(z, params["out_bn"], eps), 0.0)


if __name__ == "__main__":
    key = jax.random.PRNGKey(0)
    keys = iter(jax.random.split(key, 16))

    N, Cin, Cinter, Cout, H, W = 2, 4, 8, 8, 16, 16
    bin_sizes = (1, 2, 4)

    x = jax.random.normal(next(keys), (N, Cin, H, W), jnp.float32)

    def bn_params(k, c):
        k1, k2, k3, k4 = jax.random.split(k, 4)
        return dict(
            gamma=1.0 + 0.1 * jax.random.normal(k1, (c,), jnp.float32),
            beta=0.1 * jax.random.normal(k2, (c,), jnp.float32),
            mean=0.1 * jax.random.normal(k3, (c,), jnp.float32),
            var=jnp.abs(1.0 + 0.1 * jax.random.normal(k4, (c,), jnp.float32)))

    params = dict(
        stage_w=[0.1 * jax.random.normal(next(keys), (Cinter, Cin, 1, 1),
                                         jnp.float32) for _ in bin_sizes],
        stage_bn=[bn_params(next(keys), Cinter) for _ in bin_sizes],
        out_w=0.1 * jax.random.normal(next(keys), (Cout, Cinter, 3, 3),
                                      jnp.float32),
        out_bn=bn_params(next(keys), Cout),
    )

    out = pp_context_forward(x, params, bin_sizes=bin_sizes)
    out = jax.block_until_ready(out)

    ref = _reference(x, params, bin_sizes=bin_sizes)
    assert out.shape == (N, Cout, H, W)
    err = float(jnp.max(jnp.abs(out - ref)))
    assert err < 2e-2, f"max abs err {err}"   # bf16 MXU operands, f32 accumulate

    print("KERNEL_OK")
</pallas_src>

<mosaic_0001>
module attributes {stable_mosaic.version = 11 : i64} {
  func.func @_pp_context_kernel(%arg0: i32, %arg1: memref<1x4x256xbf16, #tpu.memory_space<vmem>>, %arg2: memref<256x21xbf16, #tpu.memory_space<vmem>>, %arg3: memref<3x8x4xbf16, #tpu.memory_space<vmem>>, %arg4: memref<3x1x21xf32, #tpu.memory_space<vmem>>, %arg5: memref<8x21xf32, #tpu.memory_space<vmem>>, %arg6: memref<9x8x8xbf16, #tpu.memory_space<vmem>>, %arg7: memref<8x1xf32, #tpu.memory_space<vmem>>, %arg8: memref<189x256xbf16, #tpu.memory_space<vmem>>, %arg9: memref<1x8x256xf32, #tpu.memory_space<vmem>>, %arg10: memref<8x189xbf16, #tpu.memory_space<vmem>>) attributes {dimension_semantics = [#tpu.dimension_semantics<parallel>], iteration_bounds = array<i64: 2>, scalar_prefetch = 0 : i64, scratch_operands = 1 : i64, tpu.core_type = #tpu.core_type<tc>, window_params = [{transform_indices = @transform_0, window_bounds = array<i64: 1, 4, 256>}, {pipeline_mode = #tpu.pipeline_mode<synchronous>, transform_indices = @transform_1, window_bounds = array<i64: 256, 21>}, {pipeline_mode = #tpu.pipeline_mode<synchronous>, transform_indices = @transform_2, window_bounds = array<i64: 3, 8, 4>}, {pipeline_mode = #tpu.pipeline_mode<synchronous>, transform_indices = @transform_3, window_bounds = array<i64: 3, 1, 21>}, {pipeline_mode = #tpu.pipeline_mode<synchronous>, transform_indices = @transform_4, window_bounds = array<i64: 8, 21>}, {pipeline_mode = #tpu.pipeline_mode<synchronous>, transform_indices = @transform_5, window_bounds = array<i64: 9, 8, 8>}, {pipeline_mode = #tpu.pipeline_mode<synchronous>, transform_indices = @transform_6, window_bounds = array<i64: 8, 1>}, {pipeline_mode = #tpu.pipeline_mode<synchronous>, transform_indices = @transform_7, window_bounds = array<i64: 189, 256>}, {transform_indices = @transform_8, window_bounds = array<i64: 1, 8, 256>}]} {
    %c0 = arith.constant 0 : index
    %c0_0 = arith.constant 0 : index
    %c0_1 = arith.constant 0 : index
    %0 = vector.load %arg1[%c0, %c0_0, %c0_1] : memref<1x4x256xbf16, #tpu.memory_space<vmem>>, vector<1x4x256xbf16>
    %1 = vector.shape_cast %0 : vector<1x4x256xbf16> to vector<4x256xbf16>
    %c0_2 = arith.constant 0 : index
    %c0_3 = arith.constant 0 : index
    %2 = vector.load %arg2[%c0_2, %c0_3] : memref<256x21xbf16, #tpu.memory_space<vmem>>, vector<256x21xbf16>
    %cst = arith.constant dense<0.000000e+00> : vector<4x21xf32>
    %3 = tpu.matmul %1, %2, %cst {dimension_numbers = #tpu.dot_dimension_numbers<[1], [0], [0], [1], [0, 0, 1, 1], [], []>} : vector<4x256xbf16>, vector<256x21xbf16>, vector<4x21xf32> -> vector<4x21xf32>
    %4 = arith.truncf %3 : vector<4x21xf32> to vector<4x21xbf16>
    %c0_4 = arith.constant 0 : index
    %c0_5 = arith.constant 0 : index
    %c0_6 = arith.constant 0 : index
    %5 = vector.load %arg3[%c0_4, %c0_5, %c0_6] : memref<3x8x4xbf16, #tpu.memory_space<vmem>>, vector<1x8x4xbf16>
    %6 = vector.shape_cast %5 : vector<1x8x4xbf16> to vector<8x4xbf16>
    %cst_7 = arith.constant dense<0.000000e+00> : vector<8x21xf32>
    %7 = tpu.matmul %6, %4, %cst_7 {dimension_numbers = #tpu.dot_dimension_numbers<[1], [0], [0], [1], [0, 0, 1, 1], [], []>} : vector<8x4xbf16>, vector<4x21xbf16>, vector<8x21xf32> -> vector<8x21xf32>
    %c0_8 = arith.constant 0 : index
    %c0_9 = arith.constant 0 : index
    %c0_10 = arith.constant 0 : index
    %8 = vector.load %arg4[%c0_8, %c0_9, %c0_10] : memref<3x1x21xf32, #tpu.memory_space<vmem>>, vector<1x1x21xf32>
    %9 = vector.shape_cast %8 : vector<1x1x21xf32> to vector<1x21xf32>
    %10 = vector.broadcast %9 : vector<1x21xf32> to vector<8x21xf32>
    %11 = arith.mulf %7, %10 : vector<8x21xf32>
    %c1 = arith.constant 1 : index
    %c0_11 = arith.constant 0 : index
    %c0_12 = arith.constant 0 : index
    %12 = vector.load %arg3[%c1, %c0_11, %c0_12] : memref<3x8x4xbf16, #tpu.memory_space<vmem>>, vector<1x8x4xbf16>
    %13 = vector.shape_cast %12 : vector<1x8x4xbf16> to vector<8x4xbf16>
    %cst_13 = arith.constant dense<0.000000e+00> : vector<8x21xf32>
    %14 = tpu.matmul %13, %4, %cst_13 {dimension_numbers = #tpu.dot_dimension_numbers<[1], [0], [0], [1], [0, 0, 1, 1], [], []>} : vector<8x4xbf16>, vector<4x21xbf16>, vector<8x21xf32> -> vector<8x21xf32>
    %c1_14 = arith.constant 1 : index
    %c0_15 = arith.constant 0 : index
    %c0_16 = arith.constant 0 : index
    %15 = vector.load %arg4[%c1_14, %c0_15, %c0_16] : memref<3x1x21xf32, #tpu.memory_space<vmem>>, vector<1x1x21xf32>
    %16 = vector.shape_cast %15 : vector<1x1x21xf32> to vector<1x21xf32>
    %17 = vector.broadcast %16 : vector<1x21xf32> to vector<8x21xf32>
    %18 = arith.mulf %14, %17 : vector<8x21xf32>
    %19 = arith.addf %11, %18 : vector<8x21xf32>
    %c2 = arith.constant 2 : index
    %c0_17 = arith.constant 0 : index
    %c0_18 = arith.constant 0 : index
    %20 = vector.load %arg3[%c2, %c0_17, %c0_18] : memref<3x8x4xbf16, #tpu.memory_space<vmem>>, vector<1x8x4xbf16>
    %21 = vector.shape_cast %20 : vector<1x8x4xbf16> to vector<8x4xbf16>
    %cst_19 = arith.constant dense<0.000000e+00> : vector<8x21xf32>
    %22 = tpu.matmul %21, %4, %cst_19 {dimension_numbers = #tpu.dot_dimension_numbers<[1], [0], [0], [1], [0, 0, 1, 1], [], []>} : vector<8x4xbf16>, vector<4x21xbf16>, vector<8x21xf32> -> vector<8x21xf32>
    %c2_20 = arith.constant 2 : index
    %c0_21 = arith.constant 0 : index
    %c0_22 = arith.constant 0 : index
    %23 = vector.load %arg4[%c2_20, %c0_21, %c0_22] : memref<3x1x21xf32, #tpu.memory_space<vmem>>, vector<1x1x21xf32>
    %24 = vector.shape_cast %23 : vector<1x1x21xf32> to vector<1x21xf32>
    %25 = vector.broadcast %24 : vector<1x21xf32> to vector<8x21xf32>
    %26 = arith.mulf %22, %25 : vector<8x21xf32>
    %27 = arith.addf %19, %26 : vector<8x21xf32>
    %c0_23 = arith.constant 0 : index
    %c0_24 = arith.constant 0 : index
    %28 = vector.load %arg5[%c0_23, %c0_24] : memref<8x21xf32, #tpu.memory_space<vmem>>, vector<8x21xf32>
    %29 = arith.addf %27, %28 : vector<8x21xf32>
    %cst_25 = arith.constant 0.000000e+00 : f32
    %30 = vector.broadcast %cst_25 : f32 to vector<8x21xf32>
    %31 = arith.maximumf %29, %30 : vector<8x21xf32>
    %32 = arith.truncf %31 : vector<8x21xf32> to vector<8x21xbf16>
    %c0_26 = arith.constant 0 : index
    %c0_27 = arith.constant 0 : index
    %c0_28 = arith.constant 0 : index
    %33 = vector.load %arg6[%c0_26, %c0_27, %c0_28] : memref<9x8x8xbf16, #tpu.memory_space<vmem>>, vector<1x8x8xbf16>
    %34 = vector.shape_cast %33 : vector<1x8x8xbf16> to vector<8x8xbf16>
    %cst_29 = arith.constant dense<0.000000e+00> : vector<8x21xf32>
    %35 = tpu.matmul %34, %32, %cst_29 {dimension_numbers = #tpu.dot_dimension_numbers<[1], [0], [0], [1], [0, 0, 1, 1], [], []>} : vector<8x8xbf16>, vector<8x21xbf16>, vector<8x21xf32> -> vector<8x21xf32>
    %36 = arith.truncf %35 : vector<8x21xf32> to vector<8x21xbf16>
    %c0_30 = arith.constant 0 : index
    %c0_31 = arith.constant 0 : index
    %37 = vector.load %arg10[%c0_30, %c0_31] : memref<8x189xbf16, #tpu.memory_space<vmem>>, vector<8x21xbf16>
    tpu.vector_store %arg10[%c0_30, %c0_31], %36 {strides = array<i32>} : memref<8x189xbf16, #tpu.memory_space<vmem>>, vector<8x21xbf16>,
    %c1_32 = arith.constant 1 : index
    %c0_33 = arith.constant 0 : index
    %c0_34 = arith.constant 0 : index
    %38 = vector.load %arg6[%c1_32, %c0_33, %c0_34] : memref<9x8x8xbf16, #tpu.memory_space<vmem>>, vector<1x8x8xbf16>
    %39 = vector.shape_cast %38 : vector<1x8x8xbf16> to vector<8x8xbf16>
    %cst_35 = arith.constant dense<0.000000e+00> : vector<8x21xf32>
    %40 = tpu.matmul %39, %32, %cst_35 {dimension_numbers = #tpu.dot_dimension_numbers<[1], [0], [0], [1], [0, 0, 1, 1], [], []>} : vector<8x8xbf16>, vector<8x21xbf16>, vector<8x21xf32> -> vector<8x21xf32>
    %41 = arith.truncf %40 : vector<8x21xf32> to vector<8x21xbf16>
    %c0_36 = arith.constant 0 : index
    %c21 = arith.constant 21 : index
    %42 = vector.load %arg10[%c0_36, %c21] : memref<8x189xbf16, #tpu.memory_space<vmem>>, vector<8x21xbf16>
    tpu.vector_store %arg10[%c0_36, %c21], %41 {strides = array<i32>} : memref<8x189xbf16, #tpu.memory_space<vmem>>, vector<8x21xbf16>,
    %c2_37 = arith.constant 2 : index
    %c0_38 = arith.constant 0 : index
    %c0_39 = arith.constant 0 : index
    %43 = vector.load %arg6[%c2_37, %c0_38, %c0_39] : memref<9x8x8xbf16, #tpu.memory_space<vmem>>, vector<1x8x8xbf16>
    %44 = vector.shape_cast %43 : vector<1x8x8xbf16> to vector<8x8xbf16>
    %cst_40 = arith.constant dense<0.000000e+00> : vector<8x21xf32>
    %45 = tpu.matmul %44, %32, %cst_40 {dimension_numbers = #tpu.dot_dimension_numbers<[1], [0], [0], [1], [0, 0, 1, 1], [], []>} : vector<8x8xbf16>, vector<8x21xbf16>, vector<8x21xf32> -> vector<8x21xf32>
    %46 = arith.truncf %45 : vector<8x21xf32> to vector<8x21xbf16>
    %c0_41 = arith.constant 0 : index
    %c42 = arith.constant 42 : index
    %47 = vector.load %arg10[%c0_41, %c42] : memref<8x189xbf16, #tpu.memory_space<vmem>>, vector<8x21xbf16>
    tpu.vector_store %arg10[%c0_41, %c42], %46 {strides = array<i32>} : memref<8x189xbf16, #tpu.memory_space<vmem>>, vector<8x21xbf16>,
    %c3 = arith.constant 3 : index
    %c0_42 = arith.constant 0 : index
    %c0_43 = arith.constant 0 : index
    %48 = vector.load %arg6[%c3, %c0_42, %c0_43] : memref<9x8x8xbf16, #tpu.memory_space<vmem>>, vector<1x8x8xbf16>
    %49 = vector.shape_cast %48 : vector<1x8x8xbf16> to vector<8x8xbf16>
    %cst_44 = arith.constant dense<0.000000e+00> : vector<8x21xf32>
    %50 = tpu.matmul %49, %32, %cst_44 {dimension_numbers = #tpu.dot_dimension_numbers<[1], [0], [0], [1], [0, 0, 1, 1], [], []>} : vector<8x8xbf16>, vector<8x21xbf16>, vector<8x21xf32> -> vector<8x21xf32>
    %51 = arith.truncf %50 : vector<8x21xf32> to vector<8x21xbf16>
    %c0_45 = arith.constant 0 : index
    %c63 = arith.constant 63 : index
    %52 = vector.load %arg10[%c0_45, %c63] : memref<8x189xbf16, #tpu.memory_space<vmem>>, vector<8x21xbf16>
    tpu.vector_store %arg10[%c0_45, %c63], %51 {strides = array<i32>} : memref<8x189xbf16, #tpu.memory_space<vmem>>, vector<8x21xbf16>,
    %c4 = arith.constant 4 : index
    %c0_46 = arith.constant 0 : index
    %c0_47 = arith.constant 0 : index
    %53 = vector.load %arg6[%c4, %c0_46, %c0_47] : memref<9x8x8xbf16, #tpu.memory_space<vmem>>, vector<1x8x8xbf16>
    %54 = vector.shape_cast %53 : vector<1x8x8xbf16> to vector<8x8xbf16>
    %cst_48 = arith.constant dense<0.000000e+00> : vector<8x21xf32>
    %55 = tpu.matmul %54, %32, %cst_48 {dimension_numbers = #tpu.dot_dimension_numbers<[1], [0], [0], [1], [0, 0, 1, 1], [], []>} : vector<8x8xbf16>, vector<8x21xbf16>, vector<8x21xf32> -> vector<8x21xf32>
    %56 = arith.truncf %55 : vector<8x21xf32> to vector<8x21xbf16>
    %c0_49 = arith.constant 0 : index
    %c84 = arith.constant 84 : index
    %57 = vector.load %arg10[%c0_49, %c84] : memref<8x189xbf16, #tpu.memory_space<vmem>>, vector<8x21xbf16>
    tpu.vector_store %arg10[%c0_49, %c84], %56 {strides = array<i32>} : memref<8x189xbf16, #tpu.memory_space<vmem>>, vector<8x21xbf16>,
    %c5 = arith.constant 5 : index
    %c0_50 = arith.constant 0 : index
    %c0_51 = arith.constant 0 : index
    %58 = vector.load %arg6[%c5, %c0_50, %c0_51] : memref<9x8x8xbf16, #tpu.memory_space<vmem>>, vector<1x8x8xbf16>
    %59 = vector.shape_cast %58 : vector<1x8x8xbf16> to vector<8x8xbf16>
    %cst_52 = arith.constant dense<0.000000e+00> : vector<8x21xf32>
    %60 = tpu.matmul %59, %32, %cst_52 {dimension_numbers = #tpu.dot_dimension_numbers<[1], [0], [0], [1], [0, 0, 1, 1], [], []>} : vector<8x8xbf16>, vector<8x21xbf16>, vector<8x21xf32> -> vector<8x21xf32>
    %61 = arith.truncf %60 : vector<8x21xf32> to vector<8x21xbf16>
    %c0_53 = arith.constant 0 : index
    %c105 = arith.constant 105 : index
    %62 = vector.load %arg10[%c0_53, %c105] : memref<8x189xbf16, #tpu.memory_space<vmem>>, vector<8x21xbf16>
    tpu.vector_store %arg10[%c0_53, %c105], %61 {strides = array<i32>} : memref<8x189xbf16, #tpu.memory_space<vmem>>, vector<8x21xbf16>,
    %c6 = arith.constant 6 : index
    %c0_54 = arith.constant 0 : index
    %c0_55 = arith.constant 0 : index
    %63 = vector.load %arg6[%c6, %c0_54, %c0_55] : memref<9x8x8xbf16, #tpu.memory_space<vmem>>, vector<1x8x8xbf16>
    %64 = vector.shape_cast %63 : vector<1x8x8xbf16> to vector<8x8xbf16>
    %cst_56 = arith.constant dense<0.000000e+00> : vector<8x21xf32>
    %65 = tpu.matmul %64, %32, %cst_56 {dimension_numbers = #tpu.dot_dimension_numbers<[1], [0], [0], [1], [0, 0, 1, 1], [], []>} : vector<8x8xbf16>, vector<8x21xbf16>, vector<8x21xf32> -> vector<8x21xf32>
    %66 = arith.truncf %65 : vector<8x21xf32> to vector<8x21xbf16>
    %c0_57 = arith.constant 0 : index
    %c126 = arith.constant 126 : index
    %67 = vector.load %arg10[%c0_57, %c126] : memref<8x189xbf16, #tpu.memory_space<vmem>>, vector<8x21xbf16>
    tpu.vector_store %arg10[%c0_57, %c126], %66 {strides = array<i32>} : memref<8x189xbf16, #tpu.memory_space<vmem>>, vector<8x21xbf16>,
    %c7 = arith.constant 7 : index
    %c0_58 = arith.constant 0 : index
    %c0_59 = arith.constant 0 : index
    %68 = vector.load %arg6[%c7, %c0_58, %c0_59] : memref<9x8x8xbf16, #tpu.memory_space<vmem>>, vector<1x8x8xbf16>
    %69 = vector.shape_cast %68 : vector<1x8x8xbf16> to vector<8x8xbf16>
    %cst_60 = arith.constant dense<0.000000e+00> : vector<8x21xf32>
    %70 = tpu.matmul %69, %32, %cst_60 {dimension_numbers = #tpu.dot_dimension_numbers<[1], [0], [0], [1], [0, 0, 1, 1], [], []>} : vector<8x8xbf16>, vector<8x21xbf16>, vector<8x21xf32> -> vector<8x21xf32>
    %71 = arith.truncf %70 : vector<8x21xf32> to vector<8x21xbf16>
    %c0_61 = arith.constant 0 : index
    %c147 = arith.constant 147 : index
    %72 = vector.load %arg10[%c0_61, %c147] : memref<8x189xbf16, #tpu.memory_space<vmem>>, vector<8x21xbf16>
    tpu.vector_store %arg10[%c0_61, %c147], %71 {strides = array<i32>} : memref<8x189xbf16, #tpu.memory_space<vmem>>, vector<8x21xbf16>,
    %c8 = arith.constant 8 : index
    %c0_62 = arith.constant 0 : index
    %c0_63 = arith.constant 0 : index
    %73 = vector.load %arg6[%c8, %c0_62, %c0_63] : memref<9x8x8xbf16, #tpu.memory_space<vmem>>, vector<1x8x8xbf16>
    %74 = vector.shape_cast %73 : vector<1x8x8xbf16> to vector<8x8xbf16>
    %cst_64 = arith.constant dense<0.000000e+00> : vector<8x21xf32>
    %75 = tpu.matmul %74, %32, %cst_64 {dimension_numbers = #tpu.dot_dimension_numbers<[1], [0], [0], [1], [0, 0, 1, 1], [], []>} : vector<8x8xbf16>, vector<8x21xbf16>, vector<8x21xf32> -> vector<8x21xf32>
    %76 = arith.truncf %75 : vector<8x21xf32> to vector<8x21xbf16>
    %c0_65 = arith.constant 0 : index
    %c168 = arith.constant 168 : index
    %77 = vector.load %arg10[%c0_65, %c168] : memref<8x189xbf16, #tpu.memory_space<vmem>>, vector<8x21xbf16>
    tpu.vector_store %arg10[%c0_65, %c168], %76 {strides = array<i32>} : memref<8x189xbf16, #tpu.memory_space<vmem>>, vector<8x21xbf16>,
    %c0_66 = arith.constant 0 : index
    %c0_67 = arith.constant 0 : index
    %78 = vector.load %arg10[%c0_66, %c0_67] : memref<8x189xbf16, #tpu.memory_space<vmem>>, vector<8x189xbf16>
    %c0_68 = arith.constant 0 : index
    %c0_69 = arith.constant 0 : index
    %79 = vector.load %arg8[%c0_68, %c0_69] : memref<189x256xbf16, #tpu.memory_space<vmem>>, vector<189x256xbf16>
    %cst_70 = arith.constant dense<0.000000e+00> : vector<8x256xf32>
    %80 = tpu.matmul %78, %79, %cst_70 {dimension_numbers = #tpu.dot_dimension_numbers<[1], [0], [0], [1], [0, 0, 1, 1], [], []>} : vector<8x189xbf16>, vector<189x256xbf16>, vector<8x256xf32> -> vector<8x256xf32>
    %c0_71 = arith.constant 0 : index
    %c0_72 = arith.constant 0 : index
    %81 = vector.load %arg7[%c0_71, %c0_72] : memref<8x1xf32, #tpu.memory_space<vmem>>, vector<8x1xf32>
    %82 = vector.broadcast %81 : vector<8x1xf32> to vector<8x256xf32>
    %83 = arith.addf %80, %82 : vector<8x256xf32>
    %cst_73 = arith.constant 0.000000e+00 : f32
    %84 = vector.broadcast %cst_73 : f32 to vector<8x256xf32>
    %85 = arith.maximumf %83, %84 : vector<8x256xf32>
    %c0_74 = arith.constant 0 : index
    %c0_75 = arith.constant 0 : index
    %c0_76 = arith.constant 0 : index
    %86 = vector.load %arg9[%c0_74, %c0_75, %c0_76] : memref<1x8x256xf32, #tpu.memory_space<vmem>>, vector<1x8x256xf32>
    %87 = vector.shape_cast %86 : vector<1x8x256xf32> to vector<8x256xf32>
    %88 = vector.shape_cast %85 : vector<8x256xf32> to vector<1x8x256xf32>
    tpu.vector_store %arg9[%c0_74, %c0_75, %c0_76], %88 {strides = array<i32>} : memref<1x8x256xf32, #tpu.memory_space<vmem>>, vector<1x8x256xf32>,
    return
  }
  func.func @transform_0(%arg0: i32) -> (i32, i32, i32) {
    %c0_i32 = arith.constant 0 : i32
    %c0_i32_0 = arith.constant 0 : i32
    %c0_i32_1 = arith.constant 0 : i32
    return %arg0, %c0_i32, %c0_i32_0 : i32, i32, i32
  }
  func.func @transform_1(%arg0: i32) -> (i32, i32) {
    %c0_i32 = arith.constant 0 : i32
    %c0_i32_0 = arith.constant 0 : i32
    %c0_i32_1 = arith.constant 0 : i32
    return %c0_i32, %c0_i32_0 : i32, i32
  }
  func.func @transform_2(%arg0: i32) -> (i32, i32, i32) {
    %c0_i32 = arith.constant 0 : i32
    %c0_i32_0 = arith.constant 0 : i32
    %c0_i32_1 = arith.constant 0 : i32
    %c0_i32_2 = arith.constant 0 : i32
    return %c0_i32, %c0_i32_0, %c0_i32_1 : i32, i32, i32
  }
  func.func @transform_3(%arg0: i32) -> (i32, i32, i32) {
    %c0_i32 = arith.constant 0 : i32
    %c0_i32_0 = arith.constant 0 : i32
    %c0_i32_1 = arith.constant 0 : i32
    %c0_i32_2 = arith.constant 0 : i32
    return %c0_i32, %c0_i32_0, %c0_i32_1 : i32, i32, i32
  }
  func.func @transform_4(%arg0: i32) -> (i32, i32) {
    %c0_i32 = arith.constant 0 : i32
    %c0_i32_0 = arith.constant 0 : i32
    %c0_i32_1 = arith.constant 0 : i32
    return %c0_i32, %c0_i32_0 : i32, i32
  }
  func.func @transform_5(%arg0: i32) -> (i32, i32, i32) {
    %c0_i32 = arith.constant 0 : i32
    %c0_i32_0 = arith.constant 0 : i32
    %c0_i32_1 = arith.constant 0 : i32
    %c0_i32_2 = arith.constant 0 : i32
    return %c0_i32, %c0_i32_0, %c0_i32_1 : i32, i32, i32
  }
  func.func @transform_6(%arg0: i32) -> (i32, i32) {
    %c0_i32 = arith.constant 0 : i32
    %c0_i32_0 = arith.constant 0 : i32
    %c0_i32_1 = arith.constant 0 : i32
    return %c0_i32, %c0_i32_0 : i32, i32
  }
  func.func @transform_7(%arg0: i32) -> (i32, i32) {
    %c0_i32 = arith.constant 0 : i32
    %c0_i32_0 = arith.constant 0 : i32
    %c0_i32_1 = arith.constant 0 : i32
    return %c0_i32, %c0_i32_0 : i32, i32
  }
  func.func @transform_8(%arg0: i32) -> (i32, i32, i32) {
    %c0_i32 = arith.constant 0 : i32
    %c0_i32_0 = arith.constant 0 : i32
    %c0_i32_1 = arith.constant 0 : i32
    return %arg0, %c0_i32, %c0_i32_0 : i32, i32, i32
  }
}

</mosaic_0001>

<bundles_post_ra>
// kernel: tpu_custom_call.1
= control target key start
LH: loop header
LB: loop body
LE: loop exit
PB: predicated region body
PF: predicated region fallthrough
CT: control target
= control target key end

     0   :  { %13 = vsyncpa [#allocation4], 0  ;;  %s2188_s0 = inlined_call_operand.vmem [shape: bf16[2,4,256], index: 0, kind: input, shape index: {}]   ;;  %s2189_s1 = inlined_call_operand.vmem [shape: bf16[256,21], index: 1, kind: input, shape index: {}]   ;;  %s2190_s2 = inlined_call_operand.vmem [shape: bf16[3,8,4], index: 2, kind: input, shape index: {}]   ;;  %s2191_s3 = inlined_call_operand.vmem [shape: f32[3,1,21], index: 3, kind: input, shape index: {}]   ;;  %s2192_s4 = inlined_call_operand.vmem [shape: f32[8,21], index: 4, kind: input, shape index: {}]   ;;  %s2193_s5 = inlined_call_operand.vmem [shape: bf16[9,8,8], index: 5, kind: input, shape index: {}]   ;;  %s2194_s6 = inlined_call_operand.vmem [shape: f32[8,1], index: 6, kind: input, shape index: {}]   ;;  %s2195_s7 = inlined_call_operand.vmem [shape: bf16[189,256], index: 7, kind: input, shape index: {}]   ;;  %s2196_s8 = inlined_call_operand.hbm [shape: f32[2,8,256], index: 8, kind: output, shape index: {}]  }
   0x1   :  { %15 = vsyncpa [#allocation4 + $0x1], 0  ;;  %s1879_s27 = smov 0   ;;  %s1881_s28 = smov 0  }
   0x2   :  { %s1883_s29 = smov 0   ;;  %s1885_s30 = smov 0  }
   0x3 LB: > { %s1900_s9 = sadd.s32 4294967295, %s1819_s30   ;;  %s1434_s10 = sadd.s32 4294967294, %s1819_s30   ;;  %s1819_s30 = sphi %s1885_s30, %s2202_s30   ;;  %s1815_s29 = sphi %s1883_s29, %s2201_s29   ;;  %s1811_s28 = sphi %s1881_s28, %s2200_s28   ;;  %s1807_s27 = sphi %s1879_s27, %s2199_s27  }
   0x4   : > { %s1904_s11 = sadd.s32 1, %s1819_s30   ;;  %s201_s12 = sadd.s32 1, %s1815_s29 }
   0x5   : > { %s198_s13 = ssub.s32 %s1819_s30, %s1904_s11  ;;  %p211_p0 = scmp.ne.s32.totalorder %s1815_s29, %s1811_s28 }
   0x6   : > { %p199_p1 = scmp.eq.s32.totalorder %s198_s13, 0  ;;  %p212_p2 = scmp.eq.s32.totalorder %s1900_s9, 1 }
   0x7   : > { %p217_p3 = scmp.ne.s32.totalorder %s1811_s28, %s1807_s27  ;;  %p218_p4 = scmp.eq.s32.totalorder %s1434_s10, 1 }
   0x8   : > { %s1915_s14 = scalar_select %p199_p1, %s1815_s29, %s201_s12  }
   0x9   : > { %p1917_p5 = por %p212_p2, %p211_p0  ;;  %p1921_p6 = por %p218_p4, %p217_p3 }
   0xa   : > { %p1437_p7 = scmp.ge.s32.totalorder %s1819_s30, 1  ;;  %p265_p8 = scmp.lt.s32.totalorder %s1819_s30, 3 }
   0xc   : > { %p266_p9 = pnand %p1437_p7, %p265_p8 }
   0xd   : > { %p299_p10 = scmp.lt.s32.totalorder (!%p266_p9), %s1900_s9, 1  ;;  %s1823_s23 = smov (!%p266_p9), 42  }
   0xe   : > { %269 = sbr.rel (%p266_p9) target bundleno = 1044 (0x414), region = 52  ;;  %s1824_s13 = smov (!%p266_p9), 21  }
   0xf   : > { %s1826_s21 = smov (!%p266_p9), 84   ;;  %s1827_s22 = smov (!%p266_p9), 63  }
  0x10   : > { %s1831_s24 = smov (!%p266_p9), 19   ;;  %s296_s12 = sand.u32 (!%p266_p9), 1, %s1811_s28  }
  0x13   : > { %v1705_v0 = vld [vmem:[%s2189_s1 + $0x78] sm:$0xff]   ;;  %v1707_v2 = vld [vmem:[%s2189_s1 + $0x70] sm:$0xff]   ;;  %v1709_v4 = vld [vmem:[%s2189_s1 + $0x68] sm:$0xff]   ;;  %s300_s10 = scalar_select %p299_p10, %s1900_s9, 1  ;;  %v1821_v18 = vmov 0.0   ;;  %vm1822_vm0 = vmmov 0  }
  0x14   : > { %v1706_v1 = vld [vmem:[%s2189_s1 + $0x38] sm:$0xff]   ;;  %1535 = vmatprep.subr.bf16.mxu0 %v1705_v0  ;;  %v1708_v3 = vld [vmem:[%s2189_s1 + $0x30] sm:$0xff]   ;;  %v1710_v5 = vld [vmem:[%s2189_s1 + $0x28] sm:$0xff]   ;;  %1599 = vmatprep.subr.bf16.mxu1 %v1821_v18  ;;  %vm491_vm1 = vcmask 1041408   ;;  %vm487_vm2 = vcmask 31744   ;;  %vm662_vm3 = vcmask 1043456  }
  0x15   : > { %1536 = vmatpush3.bf16.msra.mxu0 %v1706_v1  ;;  %v1711_v6 = vld [vmem:[%s2189_s1 + $0x60] sm:$0xff]   ;;  %s1525_s19 = sshll.u32 %s300_s10, 2  ;;  %v1713_v8 = vld [vmem:[%s2189_s1 + $0x58] sm:$0xff]   ;;  %v1715_v10 = vld [vmem:[%s2189_s1 + $0x50] sm:$0xff]   ;;  %1601 = vmatprep.mubr.msk.bf16.mxu1 %vm1822_vm0, %v1821_v18  ;;  %vm658_vm4 = vcmask 64512   ;;  %vm707_vm5 = vcmask 166912  }
  0x16   : > { %1537 = vmatprep.subr.bf16.mxu0 %v1707_v2  ;;  %v1712_v7 = vld [vmem:[%s2189_s1 + $0x20] sm:$0xff]   ;;  %s303_s26 = scalar_lea.vmem %s2188_s0, %s1525_s19  ;;  %v1714_v9 = vld [vmem:[%s2189_s1 + $0x18] sm:$0xff]   ;;  %v1716_v12 = vld [vmem:[%s2189_s1 + $0x10] sm:$0xff]   ;;  %vm1305_vm6 = vcmask 1045504   ;;  %vm1306_vm7 = vcmask 1046528   ;;  %vm761_vm8 = vcmask 339112  }
  0x17   : > { %v1441_v11 = vld.sshfl [vmem:[%s303_s26] sm:$0x33 pattern:$0x76325410]  ;;  %v1717_v14 = vld [vmem:[%s2189_s1 + $0x48] sm:$0xff]   ;;  %s1828_s26 = smov 126  }
  0x18   : > { %v346_v13 = vcombine.high %v1441_v11, %v1441_v11  ;;  %v1718_v15 = vld [vmem:[%s2189_s1 + $0x8] sm:$0xff]   ;;  %v1719_v16 = vld [vmem:[%s2189_s1 + $0x40] sm:$0xff]   ;;  %v1478_v57 = vld [vmem:[%s2193_s5 + $0x10] sm:$0xf]  ;;  %vm815_vm9 = vcmask 511312   ;;  %vm869_vm10 = vcmask 683512  }
  0x19   : > { %1538 = vmatpush3.bf16.msra.mxu0 %v1708_v3  ;;  %v1720_v17 = vld [vmem:[%s2189_s1] sm:$0xff]   ;;  %v1464_v28 = vld [vmem:[%s2190_s2 + $0x8] sm:$0xf]  ;;  %v1475_v58 = vld [vmem:[%s2193_s5 + $0xc] sm:$0xf]  ;;  %vm923_vm11 = vcmask 855712  }
  0x1a   : > { %1539 = vmatprep.subr.bf16.mxu0 %v1709_v4  ;;  %477 = vmatprep.mubr.bf16.mxu0 %v346_v13  ;;  %v486_v26 = vld [vmem:[%s2190_s2] sm:$0xf]  ;;  %v1460_v27 = vld [vmem:[%s2190_s2 + $0x4] sm:$0xf]  ;;  %v1472_v55 = vld [vmem:[%s2193_s5 + $0x8] sm:$0xf] }
  0x1b   : > { %v1463_v34 = vld [vmem:[%s2191_s3 + $0x1] ss:$0 sm:$0xff]  ;;  %v1459_v36 = vld [vmem:[%s2191_s3] ss:$0 sm:$0xff]  ;;  %v1467_v40 = vld [vmem:[%s2191_s3 + $0x2] ss:$0 sm:$0xff] }
  0x1c   : > { %v653_v45 = vld [vmem:[%s2192_s4] sm:$0xff]  ;;  %v1484_v59 = vld [vmem:[%s2193_s5 + $0x18] sm:$0xf]  ;;  %v1481_v60 = vld [vmem:[%s2193_s5 + $0x14] sm:$0xf]  ;;  %vm1031_vm12 = vcmask 1031168  }
  0x1d   : > { %1540 = vmatpush3.bf16.msra.mxu0 %v1710_v5  ;;  %v657_v54 = vld [vmem:[%s2193_s5] sm:$0xf]  ;;  %v1469_v56 = vld [vmem:[%s2193_s5 + $0x4] sm:$0xf]  ;;  %v1487_v62 = vld [vmem:[%s2193_s5 + $0x1c] sm:$0xf] }
  0x1e   : > { %1541 = vmatprep.subr.bf16.mxu0 %v1711_v6  ;;  %v1490_v61 = vld [vmem:[%s2193_s5 + $0x20] sm:$0xf]  ;;  %v1721_v63 = vld [vmem:[%s2195_s7 + $0x70] ss:$8 sps:$4 sm:$0xff]   ;;  %v1723_v0 = vld [vmem:[%s2195_s7 + $0x74] ss:$8 sps:$4 sm:$0xff]  }
  0x1f   : > { %v1726_v1 = vld [vmem:[%s2195_s7 + $0x64] ss:$8 sps:$4 sm:$0xff]   ;;  %v1724_v2 = vld [vmem:[%s2195_s7 + $0x60] ss:$8 sps:$4 sm:$0xff]   ;;  %v1729_v3 = vld [vmem:[%s2195_s7 + $0x54] ss:$8 sps:$4 sm:$0xff]  }
  0x20   : > { %v1727_v4 = vld [vmem:[%s2195_s7 + $0x50] ss:$8 sps:$4 sm:$0xff]   ;;  %v1732_v5 = vld [vmem:[%s2195_s7 + $0x44] ss:$8 sps:$4 sm:$0xff]   ;;  %v1730_v6 = vld [vmem:[%s2195_s7 + $0x40] ss:$8 sps:$4 sm:$0xff]  }
  0x21   : > { %1542 = vmatpush3.bf16.msra.mxu0 %v1712_v7  ;;  %v1733_v7 = vld [vmem:[%s2195_s7 + $0x30] ss:$8 sps:$4 sm:$0xff]   ;;  %vm1034_vm13 = vcmask 1044464   ;;  %vm1035_vm14 = vcmask 154628   ;;  %vm977_vm15 = vcmask 1027912   ;;  %s1534_s10 = sshll.u32 %s1900_s9, 8 }
  0x22   : > { %1543 = vmatprep.subr.bf16.mxu0 %v1713_v8  ;;  %v1735_v8 = vld [vmem:[%s2195_s7 + $0x34] ss:$8 sps:$4 sm:$0xff]   ;;  %s1361_s19 = scalar_lea.sflag [#allocation4], %s296_s12  ;;  %s1833_s9 = smov [#allocation3]  }
  0x25   : > { %1544 = vmatpush3.bf16.msra.mxu0 %v1714_v9  ;;  %v1736_v9 = vld [vmem:[%s2195_s7 + $0x20] ss:$8 sps:$4 sm:$0xff]  }
  0x26   : > { %1545 = vmatprep.subr.bf16.mxu0 %v1715_v10  ;;  %v1738_v10 = vld [vmem:[%s2195_s7 + $0x24] ss:$8 sps:$4 sm:$0xff]  }
  0x29   : > { %1546 = vmatpush3.bf16.msra.mxu0 %v1716_v12 }
  0x2a   : > { %1547 = vmatprep.subr.bf16.mxu0 %v1717_v14 }
  0x2d   : > { %1548 = vmatpush3.bf16.msra.mxu0 %v1718_v15 }
  0x2e   : > { %1549 = vmatprep.subr.bf16.mxu0 %v1719_v16  ;;  %v1739_v16 = vld [vmem:[%s2195_s7 + $0x10] ss:$8 sps:$4 sm:$0xff]  }
  0x31   : > { %1550 = vmatpush3.bf16.msra.mxu0 %v1720_v17 }
  0x32   : > { %1581 = vmatprep.subr.bf16.mxu0 %v1821_v18 }
  0x34   : > { %478 = vmatmul.mubr.bf16.vlgmr.msra.gmra.mxu0 %v1441_v11  ;;  %v1741_v11 = vld [vmem:[%s2195_s7 + $0x14] ss:$8 sps:$4 sm:$0xff]  }
  0x35   : > { %1583 = vmatprep.mubr.msk.bf16.mxu0 %vm1822_vm0, %v1821_v18 }
  0xf4   : > { %v1551_v19 = vpop.f32.mrf.mxu0 }
  0xf6   : > { %v1552_v20 = vpop.f32.mrf.mxu0 }
  0xf7   : > { %v1553_v21 = vadd.f32 %v1552_v20, %v1551_v19 }
  0xf8   : > { %v1554_v22 = vpop.f32.mrf.mxu0 }
  0xf9   : > { %v485_v23 = vpack.c.bf16 %v1553_v21, %v1553_v21 }
  0xfa   : > { %v1555_v24 = vpop.f32.mrf.mxu0 }
  0xfb   : > { %v493_v25 = vsel %vm491_vm1, %v485_v23, 0  ;;  %v1742_v23 = vld [vmem:[%s2195_s7] ss:$8 sps:$4 sm:$0xff]   ;;  %v1744_v24 = vld [vmem:[%s2195_s7 + $0x4] ss:$8 sps:$4 sm:$0xff]   ;;  %vm1090_vm1 = vcmask 322712  }
  0xfc   : > { %1582 = vmatpush3.bf16.msra.mxu0 %v493_v25 }
  0xfd   : > { %1587 = vmatprep.subr.bf16.mxu0 %v1821_v18 }
  0xff   : > { %1584 = vmatmul.mubr.msk.bf16.vlgmr.msra.gmra.mxu0 %vm487_vm2, %v486_v26 }
 0x100   : > { %1588 = vmatpush3.bf16.msra.mxu0 %v493_v25  ;;  %1589 = vmatprep.mubr.msk.bf16.mxu0 %vm1822_vm0, %v1821_v18 }
 0x101   : > { %1593 = vmatprep.subr.bf16.mxu0 %v1821_v18 }
 0x107   : > { %1590 = vmatmul.mubr.msk.bf16.vlgmr.msra.gmra.mxu0 %vm487_vm2, %v1460_v27 }
 0x108   : > { %1594 = vmatpush3.bf16.msra.mxu0 %v493_v25  ;;  %1595 = vmatprep.mubr.msk.bf16.mxu0 %vm1822_vm0, %v1821_v18 }
 0x109   : > { %1611 = vmatprep.subr.bf16.mxu0 %v1821_v18 }
 0x10f   : > { %1596 = vmatmul.mubr.msk.bf16.vlgmr.msra.gmra.mxu0 %vm487_vm2, %v1464_v28  ;;  %vm1144_vm2 = vcmask 494912  }
 0x110   : > { %1613 = vmatprep.mubr.msk.bf16.mxu0 %vm1822_vm0, %v1821_v18 }
 0x1bf   : > { %v529_v29 = vpop.f32.mrf.mxu0 }
 0x1c0   : > { %v542_v41 = vmul.f32 %v1459_v36, %v529_v29 }
 0x1c1   : > { %v1585_v30 = vpop.f32.mrf.mxu0 }
 0x1c3   : > { %v532_v31 = vpop.f32.mrf.mxu0 }
 0x1c5   : > { %v1586_v32 = vpop.f32.mrf.mxu0 }
 0x1c7   : > { %v582_v33 = vpop.f32.mrf.mxu0 }
 0x1c8   : > { %v596_v38 = vmul.f32 %v1463_v34, %v582_v33  ;;  %v1745_v33 = vld [vmem:[%s2195_s7 + $0xb0] ss:$8 sps:$4 sm:$0x7f]   ;;  %v1747_v34 = vld [vmem:[%s2195_s7 + $0xb4] ss:$8 sps:$4 sm:$0x7f]  }
 0x1c9   : > { %v1591_v35 = vpop.f32.mrf.mxu0 }
 0x1ca   : > { %v597_v43 = vadd.f32 %v596_v38, %v542_v41 }
 0x1cb   : > { %v585_v37 = vpop.f32.mrf.mxu0 }
 0x1cc   : > { %v1825_v37 = vmov 65535  }
 0x1cd   : > { %v1592_v39 = vpop.f32.mrf.mxu0  ;;  %v1307_v38 = vsel %vm1305_vm6, 4294967295, %v1825_v37 }
 0x1ce   : > { %v1308_v39 = vsel %vm1306_vm7, %v1307_v38, 0 }
 0x1cf   : > { %v637_v42 = vpop.f32.mrf.mxu0 }
 0x1d0   : > { %v651_v44 = vmul.f32 %v1467_v40, %v637_v42  ;;  %v1310_v42 = vand.u32 %v1745_v33, %v1308_v39 }
 0x1d1   : > { %v1597_v46 = vpop.f32.mrf.mxu0 }
 0x1d2   : > { %v652_v47 = vadd.f32 %v651_v44, %v597_v43  ;;  %v1313_v43 = vand.u32 %v1747_v34, %v1308_v39 }
 0x1d3   : > { %v640_v48 = vpop.f32.mrf.mxu0 }
 0x1d4   : > { %v654_v49 = vadd.f32 %v653_v45, %v652_v47 }
 0x1d5   : > { %v1598_v50 = vpop.f32.mrf.mxu0 }
 0x1d6   : > { %v655_v51 = vmax.f32 %v654_v49, 0.0  ;;  %v1750_v50 = vld [vmem:[%s2195_s7 + $0xa4] ss:$8 sps:$4 sm:$0xff]  }
 0x1d8   : > { %v656_v52 = vpack.c.bf16 %v655_v51, %v655_v51 }
 0x1da   : > { %v664_v53 = vsel %vm662_vm3, %v656_v52, 0  ;;  %vm1301_vm3 = vcmask 498688  }
 0x1db   : > { %1600 = vmatpush3.bf16.msra.mxu1 %v664_v53  ;;  %1612 = vmatpush3.bf16.msra.mxu0 %v664_v53 }
 0x1dc   : > { %1605 = vmatprep.subr.bf16.mxu1 %v1821_v18  ;;  %1623 = vmatprep.subr.bf16.mxu0 %v1821_v18 }
 0x1de   : > { %1602 = vmatmul.mubr.msk.bf16.vlgmr.msra.gmra.mxu1 %vm658_vm4, %v657_v54  ;;  %1614 = vmatmul.mubr.msk.bf16.vlgmr.msra.gmra.mxu0 %vm658_vm4, %v1472_v55  ;;  %v1753_v54 = vld [vmem:[%s2195_s7 + $0x94] ss:$8 sps:$4 sm:$0xff]  }
 0x1df   : > { %1606 = vmatpush3.bf16.msra.mxu1 %v664_v53  ;;  %1624 = vmatpush3.bf16.msra.mxu0 %v664_v53 }
 0x1e0   : > { %1607 = vmatprep.mubr.msk.bf16.mxu1 %vm1822_vm0, %v1821_v18  ;;  %1617 = vmatprep.subr.bf16.mxu1 %v1821_v18 }
 0x1e1   : > { %1625 = vmatprep.mubr.msk.bf16.mxu0 %vm1822_vm0, %v1821_v18  ;;  %1635 = vmatprep.subr.bf16.mxu0 %v1821_v18 }
 0x1e6   : > { %1608 = vmatmul.mubr.msk.bf16.vlgmr.msra.gmra.mxu1 %vm658_vm4, %v1469_v56  ;;  %1626 = vmatmul.mubr.msk.bf16.vlgmr.msra.gmra.mxu0 %vm658_vm4, %v1478_v57  ;;  %v1751_v57 = vld [vmem:[%s2195_s7 + $0x90] ss:$8 sps:$4 sm:$0xff]  }
 0x1e7   : > { %1618 = vmatpush3.bf16.msra.mxu1 %v664_v53  ;;  %1636 = vmatpush3.bf16.msra.mxu0 %v664_v53 }
 0x1e8   : > { %1619 = vmatprep.mubr.msk.bf16.mxu1 %vm1822_vm0, %v1821_v18  ;;  %1629 = vmatprep.subr.bf16.mxu1 %v1821_v18 }
 0x1e9   : > { %1637 = vmatprep.mubr.msk.bf16.mxu0 %vm1822_vm0, %v1821_v18  ;;  %1647 = vmatprep.subr.bf16.mxu0 %v1821_v18 }
 0x1ee   : > { %1620 = vmatmul.mubr.msk.bf16.vlgmr.msra.gmra.mxu1 %vm658_vm4, %v1475_v58  ;;  %1638 = vmatmul.mubr.msk.bf16.vlgmr.msra.gmra.mxu0 %vm658_vm4, %v1484_v59  ;;  %v1756_v59 = vld [vmem:[%s2195_s7 + $0x84] ss:$8 sps:$4 sm:$0xff]  }
 0x1ef   : > { %1630 = vmatpush3.bf16.msra.mxu1 %v664_v53  ;;  %1648 = vmatpush3.bf16.msra.mxu0 %v664_v53 }
 0x1f0   : > { %1631 = vmatprep.mubr.msk.bf16.mxu1 %vm1822_vm0, %v1821_v18  ;;  %1641 = vmatprep.subr.bf16.mxu1 %v1821_v18 }
 0x1f1   : > { %1649 = vmatprep.mubr.msk.bf16.mxu0 %vm1822_vm0, %v1821_v18 }
 0x1f6   : > { %1632 = vmatmul.mubr.msk.bf16.vlgmr.msra.gmra.mxu1 %vm658_vm4, %v1481_v60  ;;  %1650 = vmatmul.mubr.msk.bf16.vlgmr.msra.gmra.mxu0 %vm658_vm4, %v1490_v61 }
 0x1f7   : > { %1642 = vmatpush3.bf16.msra.mxu1 %v664_v53  ;;  %1643 = vmatprep.mubr.msk.bf16.mxu1 %vm1822_vm0, %v1821_v18  ;;  %v1748_v53 = vld [vmem:[%s2195_s7 + $0xa0] ss:$8 sps:$4 sm:$0xff]   ;;  %vm1036_vm0 = vmor %vm1035_vm14, %vm1034_vm13 }
 0x1f8   : > { %1315 = vmatprep.subr.bf16.mxu1 %v1723_v0 }
 0x1fe   : > { %1644 = vmatmul.mubr.msk.bf16.vlgmr.msra.gmra.mxu1 %vm658_vm4, %v1487_v62 }
 0x1ff   : > { %1316 = vmatpush1.bf16.msra.mxu1 %v1721_v63 }
 0x200   : > { %1317 = vmatprep.subr.bf16.mxu1 %v1726_v1  ;;  %v1754_v1 = vld [vmem:[%s2195_s7 + $0x80] ss:$8 sps:$4 sm:$0xff]  }
 0x203   : > { %1318 = vmatpush1.bf16.msra.mxu1 %v1724_v2 }
 0x204   : > { %1319 = vmatprep.subr.bf16.mxu1 %v1729_v3 }
 0x207   : > { %1320 = vmatpush1.bf16.msra.mxu1 %v1727_v4 }
 0x208   : > { %1321 = vmatprep.subr.bf16.mxu1 %v1732_v5 }
 0x20b   : > { %1322 = vmatpush1.bf16.msra.mxu1 %v1730_v6 }
 0x20c   : > { %1323 = vmatprep.subr.bf16.mxu1 %v1735_v8  ;;  %v1832_v8 = vmov 0  }
 0x20d   : > { %1704 = vset.pattern.permute.xlu0 %v1832_v8 }
 0x20f   : > { %1324 = vmatpush1.bf16.msra.mxu1 %v1733_v7 }
 0x210   : > { %1325 = vmatprep.subr.bf16.mxu1 %v1738_v10 }
 0x213   : > { %1326 = vmatpush1.bf16.msra.mxu1 %v1736_v9  ;;  %v1171_v9 = vld [vmem:[%s2194_s6] sm:$0xff] }
 0x214   : > { %1327 = vmatprep.subr.bf16.mxu1 %v1741_v11 }
 0x217   : > { %1328 = vmatpush1.bf16.msra.mxu1 %v1739_v16 }
 0x218   : > { %1329 = vmatprep.subr.bf16.mxu1 %v1744_v24 }
 0x21b   : > { %1330 = vmatpush1.bf16.msra.mxu1 %v1742_v23 }
 0x21c   : > { %1339 = vmatprep.subr.bf16.mxu1 %v1313_v43 }
 0x21f   : > { %1340 = vmatpush2.bf16.msra.mxu1 %v1310_v42 }
 0x220   : > { %1341 = vmatprep.subr.bf16.mxu1 %v1750_v50 }
 0x223   : > { %1342 = vmatpush2.bf16.msra.mxu1 %v1748_v53 }
 0x224   : > { %1343 = vmatprep.subr.bf16.mxu1 %v1753_v54 }
 0x227   : > { %1344 = vmatpush2.bf16.msra.mxu1 %v1751_v57 }
 0x228   : > { %1345 = vmatprep.subr.bf16.mxu1 %v1756_v59 }
 0x22b   : > { %1346 = vmatpush2.bf16.msra.mxu1 %v1754_v1 }
 0x29e   : > { %v700_v12 = vpop.f32.mrf.mxu1  ;;  %v802_v13 = vpop.f32.mrf.mxu0 }
 0x29f   : > { %v706_v14 = vpack.c.bf16 %v700_v12, %v700_v12  ;;  %v1527_v15 = vpack.c.bf16 %v802_v13, %v802_v13 }
 0x2a0   : > { %v1603_v17 = vpop.f32.mrf.mxu1  ;;  %v1615_v18 = vpop.f32.mrf.mxu0 }
 0x2a1   : > { %708 = vst.msk [vmem:[#allocation2] sm:$0xf] %vm707_vm5, %v706_v14  ;;  %812 = vrot.lane.b32.xlu0 %v1527_v15, %s1823_s23  ;;  %s1830_s23 = smov 40  }
 0x2a2   : > { %v703_v19 = vpop.f32.mrf.mxu1  ;;  %v805_v20 = vpop.f32.mrf.mxu0 }
 0x2a4   : > { %v1604_v21 = vpop.f32.mrf.mxu1  ;;  %v1616_v22 = vpop.f32.mrf.mxu0 }
 0x2a6   : > { %v748_v25 = vpop.f32.mrf.mxu1  ;;  %v910_v26 = vpop.f32.mrf.mxu0 }
 0x2a7   : > { %v1526_v27 = vpack.c.bf16 %v748_v25, %v748_v25  ;;  %v1529_v30 = vpack.c.bf16 %v910_v26, %v910_v26 }
 0x2a8   : > { %v1609_v28 = vpop.f32.mrf.mxu1  ;;  %v1627_v29 = vpop.f32.mrf.mxu0 }
 0x2a9   : > { %758 = vrot.lane.b32.xlu0 %v1526_v27, %s1824_s13  ;;  %s1438_s13 = sshll.u32 %s296_s12, 4 }
 0x2aa   : > { %v751_v31 = vpop.f32.mrf.mxu1  ;;  %v913_v32 = vpop.f32.mrf.mxu0  ;;  %s298_s17 = scalar_lea.vmem [#allocation3], %s1438_s13 }
 0x2ab   : > { %s1375_s18 = sshll.u32 %s298_s17, 4  ;;  %s1376_s18 = int_to_ptr.vmem [resolvable:$true] %s1375_s18 }
 0x2ac   : > { %v1610_v35 = vpop.f32.mrf.mxu1  ;;  %v1628_v36 = vpop.f32.mrf.mxu0 }
 0x2ad   : > { %920 = vrot.lane.b32.xlu0 %v1529_v30, %s1826_s21  ;;  %s1829_s21 = smov 105  }
 0x2ae   : > { %v856_v40 = vpop.f32.mrf.mxu1  ;;  %v1018_v41 = vpop.f32.mrf.mxu0 }
 0x2af   : > { %v1528_v44 = vpack.c.bf16 %v856_v40, %v856_v40  ;;  %v1531_v47 = vpack.c.bf16 %v1018_v41, %v1018_v41 }
 0x2b0   : > { %v1621_v45 = vpop.f32.mrf.mxu1  ;;  %v1639_v46 = vpop.f32.mrf.mxu0 }
 0x2b1   : > { %866 = vrot.lane.b32.xlu1 %v1528_v44, %s1827_s22  ;;  %s2153_s22 = scalar_lea.hbm %s2196_s8, %s1534_s10 }
 0x2b2   : > { %v859_v48 = vpop.f32.mrf.mxu1  ;;  %v1021_v49 = vpop.f32.mrf.mxu0 }
 0x2b4   : > { %v1622_v51 = vpop.f32.mrf.mxu1  ;;  %v1640_v52 = vpop.f32.mrf.mxu0 }
 0x2b5   : > { %1028 = vrot.lane.b32.xlu1 %v1531_v47, %s1828_s26 }
 0x2b6   : > { %v964_v55 = vpop.f32.mrf.mxu1  ;;  %v1131_v56 = vpop.f32.mrf.mxu0 }
 0x2b7   : > { %v1530_v58 = vpack.c.bf16 %v964_v55, %v964_v55  ;;  %v1533_v62 = vpack.c.bf16 %v1131_v56, %v1131_v56 }
 0x2b8   : > { %v1633_v60 = vpop.f32.mrf.mxu1  ;;  %v1651_v61 = vpop.f32.mrf.mxu0 }
 0x2b9   : > { %974 = vrot.lane.b32.xlu1 %v1530_v58, %s1829_s21 }
 0x2ba   : > { %v967_v63 = vpop.f32.mrf.mxu1  ;;  %v1134_v0 = vpop.f32.mrf.mxu0 }
 0x2bc   : > { %v1634_v2 = vpop.f32.mrf.mxu1  ;;  %v1652_v3 = vpop.f32.mrf.mxu0 }
 0x2bd   : > { %1141 = vrot.lane.b32.xlu1 %v1533_v62, %s1830_s23  ;;  %s1759_s23 = scalar_lea.vmem %s1376_s18, 256 }
 0x2be   : > { %v1077_v4 = vpop.f32.mrf.mxu1  ;;  %p1760_p11 = scmp.ne.s32.totalorder %s1376_s18, %s1759_s23 }
 0x2bf   : > { %v1532_v5 = vpack.c.bf16 %v1077_v4, %v1077_v4 }
 0x2c0   : > { %v1645_v6 = vpop.f32.mrf.mxu1  ;;  %p1761_p12 = pnand %p1760_p11, %p1917_p5 }
 0x2c1   : > { %1087 = vrot.lane.b32.xlu0 %v1532_v5, %s1831_s24  ;;  %s1763_s24 = sshll.u32 %s1833_s9, 4  ;;  %s1764_s24 = int_to_ptr.vmem [resolvable:$false] %s1763_s24 }
 0x2c2   : > { %v1080_v7 = vpop.f32.mrf.mxu1  ;;  %p1762_p13 = pneg %p1761_p12  ;;  %s1765_s25 = scalar_lea.vmem %s1764_s24, 512 }
 0x2c3   : > { %p1766_p0 = scmp.lt.s32.totalorder %s1376_s18, %s1764_s24  ;;  %p1767_p1 = scmp.lt.s32.totalorder %s1765_s25, %s1759_s23 }
 0x2c4   : > { %v1646_v10 = vpop.f32.mrf.mxu1 }
 0x2c5   : > { %1174 = vperm.xlu0 %1704, %v1171_v9   ;;  %p1768_p2 = por %p1767_p1, %p1766_p0 }
 0x2c7   : > { %p1769_p3 = pnand %p1768_p2, %p1762_p13 }
 0x313   : > { %v813_v11 = vpop.permute.xlu0 %812 }
 0x31b   : > { %v759_v12 = vpop.permute.xlu0 %758 }
 0x31c   : > { %762 = vst.msk [vmem:[#allocation2] sm:$0xf] %vm761_vm8, %v759_v12 }
 0x31d   : > { %816 = vst.msk [vmem:[#allocation2] sm:$0xf] %vm815_vm9, %v813_v11 }
 0x31f   : > { %v921_v13 = vpop.permute.xlu0 %920 }
 0x323   : > { %v867_v14 = vpop.permute.xlu1 %866 }
 0x324   : > { %870 = vst.msk [vmem:[#allocation2] sm:$0xf] %vm869_vm10, %v867_v14 }
 0x325   : > { %924 = vst.msk [vmem:[#allocation2] sm:$0xf] %vm923_vm11, %v921_v13 }
 0x327   : > { %v1029_v15 = vpop.permute.xlu1 %1028 }
 0x328   : > { %v1030_v16 = vrot.slane %v1029_v15, 4 }
 0x32a   : > { %v1032_v17 = vsel %vm1031_vm12, %v1030_v16, %v1029_v15 }
 0x32b   : > { %v975_v18 = vpop.permute.xlu1 %974 }
 0x32c   : > { %978 = vst.msk [vmem:[#allocation2] sm:$0xf] %vm977_vm15, %v975_v18 }
 0x32d   : > { %1037 = vst.msk [vmem:[#allocation2] sm:$0xff] %vm1036_vm0, %v1032_v17 }
 0x32f   : > { %v1142_v19 = vpop.permute.xlu1 %1141 }
 0x333   : > { %v1088_v20 = vpop.permute.xlu0 %1087 }
 0x334   : > { %1091 = vst.msk [vmem:[#allocation2 + $0x4] sm:$0xf] %vm1090_vm1, %v1088_v20 }
 0x335   : > { %1145 = vst.msk [vmem:[#allocation2 + $0x4] sm:$0xf] %vm1144_vm2, %v1142_v19 }
 0x33c   : > { %v1146_v21 = vld [vmem:[#allocation2] sm:$0xff] }
 0x33d   : > { %v1494_v22 = vcombine.high %v1146_v21, %v1146_v21  ;;  %v1493_v23 = vcombine.low %v1146_v21, %v1146_v21 }
 0x33f   : > { %1519 = vmatprep.mubr.msk.bf16.mxu1 %vm1301_vm3, %v1494_v22 }
 0x340   : > { %1348 = vmatmul.mubr.bf16.vlgmr.msra.gmra.mxu1 %v1493_v23  ;;  %v1175_v24 = vpop.permute.xlu0 %1174 }
 0x400   : > { %v1349_v25 = vpop.f32.mrf.mxu1 }
 0x401   : > { %v1350_v26 = vadd.f32 %v1349_v25, %v1175_v24 }
 0x402   : > { %v1351_v27 = vpop.f32.mrf.mxu1 }
 0x403   : > { %v1356_v28 = vmax.f32 %v1350_v26, 0.0  ;;  %v1352_v29 = vadd.f32 %v1351_v27, %v1175_v24 }
 0x404   : > { %v1353_v30 = vpop.f32.mrf.mxu1 }
 0x405   : > { %1358 = vst [vmem:[%s298_s17] sm:$0xff] %v1356_v28  ;;  %v1357_v31 = vmax.f32 %v1352_v29, 0.0 }
 0x406   : > { %v1354_v32 = vpop.f32.mrf.mxu1 }
 0x407   : > { %1359 = vst [vmem:[%s298_s17 + $0x8] sm:$0xff] %v1357_v31 }
 0x408   : > { %1772 = shalt.err (!%p1769_p3)
}
 0x409   : > { %s1773_s26 = scalar_lea.hbm %s2153_s22, 256  ;;  %s1777_s10 = scalar_lea.hbm %s2196_s8, 512 }
 0x40a   : > { %p1774_p4 = scmp.ne.s32.totalorder %s2153_s22, %s1773_s26  ;;  %p1778_p9 = scmp.lt.s32.totalorder %s2153_s22, %s2196_s8 }
 0x40b   : > { %p1779_p10 = scmp.lt.s32.totalorder %s1777_s10, %s1773_s26 }
 0x40c   : > { %p1775_p7 = pnand %p1774_p4, %p1917_p5 }
 0x40d   : > { %p1780_p11 = por %p1779_p10, %p1778_p9 }
 0x40e   : > { %p1776_p8 = pneg %p1775_p7 }
 0x410   : > { %p1781_p12 = pnand %p1780_p11, %p1776_p8 }
 0x412   : > { %1784 = shalt.err (!%p1781_p12)
}
 0x413   : > { %1653 = dma.vmem_to_hbm [thread:$0]  (%p1917_p5), %s1376_s18, 256, %s2153_s22, %s1361_s19  }
 0x414 PF: > { %p1659_p13 = scmp.ge.s32.totalorder %s1819_s30, 2  ;;  %s1387_s21 = sand.u32 1, %s1807_s27  }
 0x415   : > { %s1388_s23 = scalar_lea.sflag [#allocation4], %s1387_s21 }
 0x416   : > { %p1656_p0 = pnand %p1659_p13, %p1921_p6 }
 0x418   : > { %p1657_p1 = pneg %p1656_p0 }
 0x41a   : > { %1802 = dma.done.wait (%p1657_p1), %s1388_s23, 256  }
 0x41b   : > { %1804 = vsyncadd (%p1657_p1), %s1388_s23, 4294967040  ;;  %p18_p2 = scmp.ge.s32.totalorder %s1904_s11, 4   ;;  %s2199_s27 = smov %s1811_s28 }
 0x41c   : > { %s2200_s28 = smov %s1815_s29  ;;  %s2201_s29 = smov %s1915_s14 }
 0x41d   : > { %s2202_s30 = smov %s1904_s11  ;;  %20 = sbr.rel (!%p18_p2) target bundleno = 3 (0x3), region = 99 }
 0x422   :  { %1393 = vsyncpa [#allocation4], 1 }
 0x423   :  { %1395 = vsyncpa [#allocation4 + $0x1], 1 }

</bundles_post_ra>
